<compile_context>
chip_gen: v7x
topology: tpu7x:2x2x1
jax: 0.10.0
libtpu: 0.0.40
codegen_flags: <defaults>
</compile_context>

<pallas_src>
import functools

import jax
import jax.numpy as jnp
import numpy as np
from jax.experimental import pallas as pl
from jax.experimental.pallas import tpu as pltpu

EPS = 1e-5


def _pick_tile(total, align, max_tile, min_blocks=1):
    """Largest multiple of `align` that divides `total`, is <= max_tile and (when
    possible) yields >= min_blocks blocks; falls back to the full extent, which
    is always a legal Pallas block shape."""
    if total % align != 0:
        return total
    cap = min(max_tile, total)
    if min_blocks > 1 and total >= min_blocks * align:
        cap = min(cap, (total // min_blocks) // align * align)
    t = max(align, (cap // align) * align)
    while t >= align:
        if total % t == 0:
            return t
        t -= align
    return total


# ----------------------------- Pallas kernels ------------------------------

def _stats_kernel(x_ref, mean_ref, var_ref, *, n_spatial):
    """Per-row mean / unbiased variance over the lane axis.

    Grid: (row_tiles, col_tiles); col axis is the reduction ("arbitrary").
    mean_ref / var_ref double as the running sum / sum-of-squares accumulators
    (output blocks are resident across the reduction axis).
    """
    j = pl.program_id(1)

    @pl.when(j == 0)
    def _():
        mean_ref[...] = jnp.zeros_like(mean_ref)
        var_ref[...] = jnp.zeros_like(var_ref)

    xt = x_ref[...].astype(jnp.float32)                        # per-tile cast only
    mean_ref[...] += jnp.sum(xt, axis=1, keepdims=True)        # running sum
    var_ref[...] += jnp.sum(xt * xt, axis=1, keepdims=True)    # running sum of squares

    @pl.when(j == pl.num_programs(1) - 1)
    def _():
        cnt = jnp.float32(n_spatial)
        m = mean_ref[...] / cnt
        # unbiased variance (torch.var default): (sumsq - S*m^2) / (S - 1),
        # clamped at 0 to guard catastrophic cancellation for large offsets.
        v = (var_ref[...] - cnt * m * m) / (cnt - 1.0)
        mean_ref[...] = m
        var_ref[...] = jnp.maximum(v, 0.0)


def _apply_kernel(x_ref, scale_ref, shift_ref, o_ref):
    # y = x * scale + shift; compute in f32, load/store in the native dtype.
    xt = x_ref[...].astype(jnp.float32)
    o_ref[...] = (xt * scale_ref[...] + shift_ref[...]).astype(o_ref.dtype)


# ------------------------------- wrapper -----------------------------------

def randomizer_forward(x_nchw, idx_swap, alpha_blend, *, eps=EPS, training=True):
    """Randomizer.forward. `idx_swap`: int array (N,); `alpha_blend`: (1,) or (N,1,1)."""
    if not training:
        return x_nchw

    n, c, h, w = x_nchw.shape
    r, s = n * c, h * w
    assert s > 1, "unbiased variance needs H*W > 1"

    x_flat = x_nchw.reshape(r, s)              # native dtype, no copy

    # ---- tiling ----
    ts = _pick_tile(s, 128, 1024)              # lane-dense when s % 128 == 0
    # cap the x tile at ~2 MiB (f32 accounting) so double-buffered in+out tiles
    # fit the default scoped-VMEM limit on every generation
    tr_max = max(8, min(256, ((2 << 20) // (ts * 4)) // 8 * 8))
    tr = _pick_tile(r, 8, tr_max, min_blocks=2)  # >=2 row blocks when possible (v7x)
    grid = (r // tr, s // ts)

    # ---- pass 1: per-row statistics (single-pass sum / sumsq reduction) ----
    mean_p, var_p = pl.pallas_call(
        functools.partial(_stats_kernel, n_spatial=s),
        out_shape=(jax.ShapeDtypeStruct((r, 1), jnp.float32),
                   jax.ShapeDtypeStruct((r, 1), jnp.float32)),
        grid=grid,
        in_specs=[pl.BlockSpec((tr, ts), lambda i, j: (i, j))],
        out_specs=(pl.BlockSpec((tr, 1), lambda i, j: (i, 0)),
                   pl.BlockSpec((tr, 1), lambda i, j: (i, 0))),
        compiler_params=pltpu.CompilerParams(
            dimension_semantics=("parallel", "arbitrary")),
    )(x_flat)

    mean = mean_p.reshape(n, c, 1)
    var = var_p.reshape(n, c, 1)

    # ---- tiny O(N*C) mixing glue (randperm gather + alpha blend), plain JAX ----
    a = alpha_blend.astype(jnp.float32)
    mean_mix = a * mean + (1.0 - a) * mean[idx_swap]
    var_mix = a * var + (1.0 - a) * var[idx_swap]
    # out = (x - mean)/sqrt(var+eps) * sqrt(var_mix+eps) + mean_mix = x*scale + shift
    scale = jnp.sqrt((var_mix + eps) / (var + eps))
    shift = mean_mix - mean * scale
    scale = scale.reshape(r, 1)
    shift = shift.reshape(r, 1)

    # ---- pass 2: lane-dense elementwise apply (both axes parallel) ----
    # make sure the fully-parallel apply grid has >= 2 blocks (v7x: 2 TCs)
    ts_apply = ts
    if grid[0] == 1 and ts == s and s % 128 == 0 and s >= 256:
        ts_apply = _pick_tile(s, 128, s // 2)
    grid_apply = (r // tr, s // ts_apply)

    y_flat = pl.pallas_call(
        _apply_kernel,
        out_shape=jax.ShapeDtypeStruct((r, s), x_nchw.dtype),   # native dtype store
        grid=grid_apply,
        in_specs=[pl.BlockSpec((tr, ts_apply), lambda i, j: (i, j)),
                  pl.BlockSpec((tr, 1), lambda i, j: (i, 0)),
                  pl.BlockSpec((tr, 1), lambda i, j: (i, 0))],
        out_specs=pl.BlockSpec((tr, ts_apply), lambda i, j: (i, j)),
        compiler_params=pltpu.CompilerParams(
            dimension_semantics=("parallel", "parallel")),
    )(x_flat, scale, shift)

    return y_flat.reshape(n, c, h, w)          # pure reshape, no extra pass


# ------------------------------ reference ----------------------------------

def ref_forward(x_nchw, idx_swap, alpha_blend, eps=EPS):
    n, c, h, w = x_nchw.shape
    xr = x_nchw.reshape(n, c, h * w).astype(jnp.float32)
    mean = jnp.mean(xr, axis=-1, keepdims=True)
    var = jnp.var(xr, axis=-1, keepdims=True, ddof=1)   # torch.var default (unbiased)
    xn = (xr - mean) / jnp.sqrt(var + eps)
    a = alpha_blend.astype(jnp.float32)
    mean_mix = a * mean + (1.0 - a) * mean[idx_swap]
    var_mix = a * var + (1.0 - a) * var[idx_swap]
    out = xn * jnp.sqrt(var_mix + eps) + mean_mix
    return out.reshape(n, c, h, w)


if __name__ == "__main__":
    key = jax.random.PRNGKey(0)
    k_x, k_perm, k_alpha = jax.random.split(key, 3)

    N, C, H, W = 2, 4, 16, 16
    x = jax.random.normal(k_x, (N, C, H, W), jnp.float32)

    # module RNG (torch.randperm / torch.rand) sampled once, shared by kernel & ref
    idx_swap = jax.random.permutation(k_perm, N)
    alpha_ones = jnp.ones((1,), jnp.float32)                          # self.alpha = False
    alpha_rand = jax.random.uniform(k_alpha, (N, 1, 1), jnp.float32)  # self.alpha = True

    # f32 path
    for a in (alpha_ones, alpha_rand):
        out = jax.block_until_ready(randomizer_forward(x, idx_swap, a))
        ref = jax.block_until_ready(ref_forward(x, idx_swap, a))
        assert out.shape == (N, C, H, W) and out.dtype == x.dtype
        np.testing.assert_allclose(np.asarray(out), np.asarray(ref),
                                   rtol=1e-4, atol=1e-4)

    # native bf16 path (no f32 up-cast pass; output rounded to bf16)
    x_bf16 = x.astype(jnp.bfloat16)
    out_bf = jax.block_until_ready(randomizer_forward(x_bf16, idx_swap, alpha_ones))
    ref_bf = jax.block_until_ready(ref_forward(x_bf16, idx_swap, alpha_ones))
    assert out_bf.dtype == jnp.bfloat16
    np.testing.assert_allclose(np.asarray(out_bf, dtype=np.float32),
                               np.asarray(ref_bf), rtol=2e-2, atol=2e-2)

    # eval mode is the identity
    out_eval = jax.block_until_ready(
        randomizer_forward(x, idx_swap, alpha_ones, training=False))
    np.testing.assert_allclose(np.asarray(out_eval), np.asarray(x))

    print("KERNEL_OK")
</pallas_src>

<mosaic_0001>
module attributes {stable_mosaic.version = 11 : i64} {
  func.func @_stats_kernel(%arg0: i32, %arg1: i32, %arg2: memref<8x256xf32, #tpu.memory_space<vmem>>, %arg3: memref<8x1xf32, #tpu.memory_space<vmem>>, %arg4: memref<8x1xf32, #tpu.memory_space<vmem>>) attributes {dimension_semantics = [#tpu.dimension_semantics<parallel>, #tpu.dimension_semantics<arbitrary>], iteration_bounds = array<i64: 1, 1>, scalar_prefetch = 0 : i64, scratch_operands = 0 : i64, tpu.core_type = #tpu.core_type<tc>, window_params = [{transform_indices = @transform_0, window_bounds = array<i64: 8, 256>}, {transform_indices = @transform_1, window_bounds = array<i64: 8, 1>}, {transform_indices = @transform_2, window_bounds = array<i64: 8, 1>}]} {
    %c0_i32 = arith.constant 0 : i32
    %0 = arith.cmpi eq, %arg1, %c0_i32 : i32
    %1 = arith.extui %0 : i1 to i32
    %c0_i32_0 = arith.constant 0 : i32
    %2 = arith.cmpi ne, %1, %c0_i32_0 : i32
    scf.if %2 {
      %cst_13 = arith.constant 0.000000e+00 : f32
      %18 = vector.broadcast %cst_13 : f32 to vector<8x1xf32>
      %c0_14 = arith.constant 0 : index
      %c0_15 = arith.constant 0 : index
      %19 = vector.load %arg3[%c0_14, %c0_15] : memref<8x1xf32, #tpu.memory_space<vmem>>, vector<8x1xf32>
      tpu.vector_store %arg3[%c0_14, %c0_15], %18 {strides = array<i32>} : memref<8x1xf32, #tpu.memory_space<vmem>>, vector<8x1xf32>,
      %cst_16 = arith.constant 0.000000e+00 : f32
      %20 = vector.broadcast %cst_16 : f32 to vector<8x1xf32>
      %c0_17 = arith.constant 0 : index
      %c0_18 = arith.constant 0 : index
      %21 = vector.load %arg4[%c0_17, %c0_18] : memref<8x1xf32, #tpu.memory_space<vmem>>, vector<8x1xf32>
      tpu.vector_store %arg4[%c0_17, %c0_18], %20 {strides = array<i32>} : memref<8x1xf32, #tpu.memory_space<vmem>>, vector<8x1xf32>,
    } else {
    }
    %c0 = arith.constant 0 : index
    %c0_1 = arith.constant 0 : index
    %3 = vector.load %arg2[%c0, %c0_1] : memref<8x256xf32, #tpu.memory_space<vmem>>, vector<8x256xf32>
    %c0_2 = arith.constant 0 : index
    %c0_3 = arith.constant 0 : index
    %4 = vector.load %arg3[%c0_2, %c0_3] : memref<8x1xf32, #tpu.memory_space<vmem>>, vector<8x1xf32>
    %cst = arith.constant dense<0.000000e+00> : vector<8xf32>
    %5 = vector.multi_reduction <add>, %3, %cst [1] : vector<8x256xf32> to vector<8xf32>
    %6 = vector.shape_cast %5 : vector<8xf32> to vector<8x1xf32>
    %7 = arith.addf %4, %6 : vector<8x1xf32>
    %c0_4 = arith.constant 0 : index
    %c0_5 = arith.constant 0 : index
    %8 = vector.load %arg3[%c0_4, %c0_5] : memref<8x1xf32, #tpu.memory_space<vmem>>, vector<8x1xf32>
    tpu.vector_store %arg3[%c0_4, %c0_5], %7 {strides = array<i32>} : memref<8x1xf32, #tpu.memory_space<vmem>>, vector<8x1xf32>,
    %c0_6 = arith.constant 0 : index
    %c0_7 = arith.constant 0 : index
    %9 = vector.load %arg4[%c0_6, %c0_7] : memref<8x1xf32, #tpu.memory_space<vmem>>, vector<8x1xf32>
    %10 = arith.mulf %3, %3 : vector<8x256xf32>
    %cst_8 = arith.constant dense<0.000000e+00> : vector<8xf32>
    %11 = vector.multi_reduction <add>, %10, %cst_8 [1] : vector<8x256xf32> to vector<8xf32>
    %12 = vector.shape_cast %11 : vector<8xf32> to vector<8x1xf32>
    %13 = arith.addf %9, %12 : vector<8x1xf32>
    %c0_9 = arith.constant 0 : index
    %c0_10 = arith.constant 0 : index
    %14 = vector.load %arg4[%c0_9, %c0_10] : memref<8x1xf32, #tpu.memory_space<vmem>>, vector<8x1xf32>
    tpu.vector_store %arg4[%c0_9, %c0_10], %13 {strides = array<i32>} : memref<8x1xf32, #tpu.memory_space<vmem>>, vector<8x1xf32>,
    %c0_i32_11 = arith.constant 0 : i32
    %15 = arith.cmpi eq, %arg1, %c0_i32_11 : i32
    %16 = arith.extui %15 : i1 to i32
    %c0_i32_12 = arith.constant 0 : i32
    %17 = arith.cmpi ne, %16, %c0_i32_12 : i32
    scf.if %17 {
      %c0_13 = arith.constant 0 : index
      %c0_14 = arith.constant 0 : index
      %18 = vector.load %arg3[%c0_13, %c0_14] : memref<8x1xf32, #tpu.memory_space<vmem>>, vector<8x1xf32>
      %cst_15 = arith.constant 2.560000e+02 : f32
      %19 = vector.broadcast %cst_15 : f32 to vector<8x1xf32>
      %20 = arith.divf %18, %19 : vector<8x1xf32>
      %c0_16 = arith.constant 0 : index
      %c0_17 = arith.constant 0 : index
      %21 = vector.load %arg4[%c0_16, %c0_17] : memref<8x1xf32, #tpu.memory_space<vmem>>, vector<8x1xf32>
      %cst_18 = arith.constant 2.560000e+02 : f32
      %22 = vector.broadcast %cst_18 : f32 to vector<8x1xf32>
      %23 = arith.mulf %22, %20 : vector<8x1xf32>
      %24 = arith.mulf %23, %20 : vector<8x1xf32>
      %25 = arith.subf %21, %24 : vector<8x1xf32>
      %cst_19 = arith.constant 2.560000e+02 : f32
      %cst_20 = arith.constant 1.000000e+00 : f32
      %26 = arith.subf %cst_19, %cst_20 : f32
      %27 = vector.broadcast %26 : f32 to vector<8x1xf32>
      %28 = arith.divf %25, %27 : vector<8x1xf32>
      %c0_21 = arith.constant 0 : index
      %c0_22 = arith.constant 0 : index
      %29 = vector.load %arg3[%c0_21, %c0_22] : memref<8x1xf32, #tpu.memory_space<vmem>>, vector<8x1xf32>
      tpu.vector_store %arg3[%c0_21, %c0_22], %20 {strides = array<i32>} : memref<8x1xf32, #tpu.memory_space<vmem>>, vector<8x1xf32>,
      %cst_23 = arith.constant 0.000000e+00 : f32
      %30 = vector.broadcast %cst_23 : f32 to vector<8x1xf32>
      %31 = arith.maximumf %28, %30 : vector<8x1xf32>
      %c0_24 = arith.constant 0 : index
      %c0_25 = arith.constant 0 : index
      %32 = vector.load %arg4[%c0_24, %c0_25] : memref<8x1xf32, #tpu.memory_space<vmem>>, vector<8x1xf32>
      tpu.vector_store %arg4[%c0_24, %c0_25], %31 {strides = array<i32>} : memref<8x1xf32, #tpu.memory_space<vmem>>, vector<8x1xf32>,
    } else {
    }
    return
  }
  func.func @transform_0(%arg0: i32, %arg1: i32) -> (i32, i32) {
    %c0_i32 = arith.constant 0 : i32
    return %arg0, %arg1 : i32, i32
  }
  func.func @transform_1(%arg0: i32, %arg1: i32) -> (i32, i32) {
    %c0_i32 = arith.constant 0 : i32
    %c0_i32_0 = arith.constant 0 : i32
    return %arg0, %c0_i32 : i32, i32
  }
  func.func @transform_2(%arg0: i32, %arg1: i32) -> (i32, i32) {
    %c0_i32 = arith.constant 0 : i32
    %c0_i32_0 = arith.constant 0 : i32
    return %arg0, %c0_i32 : i32, i32
  }
}

</mosaic_0001>

<bundles_post_ra>
// kernel: tpu_custom_call.1
= control target key start
LH: loop header
LB: loop body
LE: loop exit
PB: predicated region body
PF: predicated region fallthrough
CT: control target
= control target key end

     0   :  { %8 = vsyncpa [#allocation3], 0  ;;  %s96_s9 = smov [#allocation2]   ;;  %s161_s0 = inlined_call_operand.hbm [shape: f32[8,256], index: 0, kind: input, shape index: {}]   ;;  %s162_s1 = inlined_call_operand.vmem [shape: f32[8,1], index: 1, kind: output, shape index: {0}]   ;;  %s163_s2 = inlined_call_operand.vmem [shape: f32[8,1], index: 2, kind: output, shape index: {1}]  }
   0x1   :  { %s15_s10 = sshll.u32 %s96_s9, 4  ;;  %s72_s13 = scalar_lea.hbm %s161_s0, 256  ;;  %s16_s10 = int_to_ptr.vmem [resolvable:$true] %s15_s10 }
   0x2   :  { %p73_p0 = scmp.ne.s32.totalorder %s161_s0, %s72_s13  ;;  %p76_p1 = scmp.lt.u32.totalorder %s72_s13, %s161_s0 }
   0x4   :  { %p78_p2 = pnand %p76_p1, %p73_p0 }
   0x6   :  { %81 = shalt.err (!%p78_p2)
}
   0x7   :  { %s82_s18 = scalar_lea.vmem %s16_s10, 256  ;;  %p87_p4 = scmp.lt.s32.totalorder %s16_s10, %s16_s10 }
   0x8   :  { %p83_p3 = scmp.ne.s32.totalorder %s16_s10, %s82_s18  ;;  %p88_p5 = scmp.lt.s32.totalorder %s82_s18, %s82_s18 }
   0xa   :  { %p89_p6 = por %p88_p5, %p87_p4 }
   0xc   :  { %p90_p7 = pnand %p89_p6, %p83_p3 }
   0xe   :  { %93 = shalt.err (!%p90_p7)
}
   0xf   :  { %18 = dma.hbm_to_vmem [thread:$0]  %s161_s0, 256, %s16_s10, [#allocation3]  }
  0x10   :  { %94 = dma.done.wait [#allocation3], 256  }
  0x11   :  { %95 = vsyncadd [#allocation3], 4294967040  ;;  %vm26_vm0 = vcmask 7168   ;;  %v97_v0 = vmov 0.0   ;;  %v29_v1 = vld [vmem:[#allocation2] sm:$0xff]  ;;  %v30_v2 = vld [vmem:[#allocation2 + $0x8] sm:$0xff] }
  0x12   :  { %27 = vst.msk [vmem:[%s162_s1] sm:$0xff] %vm26_vm0, %v97_v0  ;;  %28 = vst.msk [vmem:[%s163_s2] sm:$0xff] %vm26_vm0, %v97_v0  ;;  %v32_v3 = vadd.f32 %v30_v2, %v29_v1  ;;  %v39_v4 = vmul.f32 %v29_v1, %v29_v1  ;;  %v40_v5 = vmul.f32 %v30_v2, %v30_v2 }
  0x14   :  { %33 = vadd.xlane.f32.xlu0 %v32_v3  ;;  %v41_v6 = vadd.f32 %v40_v5, %v39_v4 }
  0x18   :  { %42 = vadd.xlane.f32.xlu0 %v41_v6 }
  0x19   :  { %v31_v7 = vld [vmem:[%s162_s1] sm:$0xff] }
  0x1a   :  { %v38_v10 = vld [vmem:[%s163_s2] sm:$0xff] }
  0xa1   :  { %v34_v8 = vpop.xlane.xlu0 %33 }
  0xa2   :  { %v35_v9 = vadd.f32 %v34_v8, %v31_v7 }
  0xa4   :  { %37 = vst.msk [vmem:[%s162_s1] sm:$0xff] %vm26_vm0, %v35_v9 }
  0xa5   :  { %v43_v11 = vpop.xlane.xlu0 %42 }
  0xa6   :  { %v44_v12 = vadd.f32 %v43_v11, %v38_v10 }
  0xa8   :  { %45 = vst.msk [vmem:[%s163_s2] sm:$0xff] %vm26_vm0, %v44_v12 }
  0xab   :  { %v49_v13 = vld [vmem:[%s162_s1] sm:$0xff] }
  0xac   :  { %v51_v14 = vmul.f32 0.00390625, %v49_v13 }
  0xae   :  { %58 = vst.msk [vmem:[%s162_s1] sm:$0xff] %vm26_vm0, %v51_v14  ;;  %v53_v15 = vmul.f32 256.0, %v51_v14 }
  0xaf   :  { %v52_v16 = vld [vmem:[%s163_s2] sm:$0xff] }
  0xb0   :  { %v54_v17 = vmul.f32 %v53_v15, %v51_v14 }
  0xb2   :  { %v55_v18 = vsub.f32 %v52_v16, %v54_v17 }
  0xb4   :  { %v57_v19 = vmul.f32 0.003921569, %v55_v18 }
  0xb6   :  { %v59_v20 = vmax.f32 %v57_v19, 0.0 }
  0xb8   :  { %60 = vst.msk [vmem:[%s163_s2] sm:$0xff] %vm26_vm0, %v59_v20 }
  0xb9   :  { %69 = vsyncpa [#allocation3], 1 }

</bundles_post_ra>
